<compile_context>
chip_gen: v6e
topology: v6e:2x2x1
jax: 0.10.0
libtpu: 0.0.40
codegen_flags: <defaults>
</compile_context>

<pallas_src>
import functools

import jax
import jax.numpy as jnp
from jax.experimental import pallas as pl
from jax.experimental.pallas import tpu as pltpu

_LANE = 128    # TPU lane width: pad layer_size (N) up to a multiple of this
_MAX_TK = 512  # K-block size (multiple of 128); double-buffered tiles stay tiny


def _ska_forward_kernel(x_ref, w_ref, b_ref, d_ref, znorm_ref, acc_ref):
    """One K-block of z = x @ W; bias + sigmoid + ||z||_F on the last block.

    x_ref    : (B, tk)       bf16 VMEM   activation K-tile
    w_ref    : (tk, Npad)    bf16 VMEM   weight K-tile
    b_ref    : (1, Npad)     f32  VMEM   bias (zero in padded lanes)
    d_ref    : (B, Npad)     f32  VMEM   output D = sigmoid(z)   (resident across K)
    znorm_ref: (1, 1)        f32  SMEM   scalar ||z||_F
    acc_ref  : (B, Npad)     f32  VMEM scratch accumulator for z
    """
    k = pl.program_id(0)

    @pl.when(k == 0)
    def _init():
        acc_ref[...] = jnp.zeros_like(acc_ref)

    # MXU: bf16 operands, f32 accumulation.
    acc_ref[...] += jnp.dot(x_ref[...], w_ref[...],
                            preferred_element_type=jnp.float32)

    @pl.when(k == pl.num_programs(0) - 1)
    def _finalize():
        z = acc_ref[...] + b_ref[...]          # f32 elementwise
        d_ref[...] = jax.nn.sigmoid(z)         # exp -> EUP slot
        # Frobenius norm; padded lanes have w=0, b=0 -> z=0 -> contribute 0.
        znorm_ref[0, 0] = jnp.sqrt(jnp.sum(z * z))


def _round_up(v, m):
    return -(-v // m) * m


def _pick_tk(k_size):
    """K-block size: a multiple of 128, capped at _MAX_TK."""
    return min(_round_up(max(k_size, 1), _LANE), _MAX_TK)


def prepare_ska_params(weight, bias, compute_dtype=jnp.bfloat16):
    """One-time parameter prep (hoisted out of the per-step forward path).

    Pads layer_size (lane/N dim) with zero columns up to a multiple of 128 and
    input_size (K dim) with zero rows up to a multiple of the K tile, and stores
    the weight in the MXU compute dtype (bf16 by default: native on v6e/v7x,
    supported on v5e). Returns (weight_padded, bias_padded[1, Npad] f32).
    """
    input_size, layer_size = weight.shape
    n_pad = _round_up(layer_size, _LANE) - layer_size
    tk = _pick_tk(input_size)
    k_pad = _round_up(input_size, tk) - input_size
    w = jnp.pad(jnp.asarray(weight, jnp.float32), ((0, k_pad), (0, n_pad)))
    b = jnp.pad(jnp.asarray(bias, jnp.float32), (0, n_pad)).reshape(1, -1)
    return w.astype(compute_dtype), b


@functools.partial(jax.jit, static_argnames=("layer_size",))
def pure_ska_forward(x, w_prepped, b_prepped, *, layer_size):
    """Pallas forward for PureSKAGenerator.

    Returns (D, z_frobenius_norm):
      D      = sigmoid(x.reshape(batch, -1) @ weight + bias)  shape (batch, layer_size)
      z_norm = ||z||_F (scalar; the value PyTorch appends to frobenius_evolution)
    """
    batch = x.shape[0]
    x_flat = x.reshape(batch, -1)                 # == torch .view(batch, -1)
    k_size = x_flat.shape[1]
    k_padded, n_padded = w_prepped.shape
    assert k_padded >= k_size, "flattened input does not match prepared weight"

    tk = _pick_tk(k_size)
    assert k_padded % tk == 0
    num_k = k_padded // tk

    # Zero-pad K to the prepared (tiled) width; cast activations to MXU dtype.
    x_c = jnp.pad(x_flat, ((0, 0), (0, k_padded - k_size))).astype(w_prepped.dtype)

    cost = pl.CostEstimate(
        flops=2 * batch * k_padded * n_padded,
        transcendentals=batch * n_padded,
        bytes_accessed=int(x_c.size * x_c.dtype.itemsize
                           + w_prepped.size * w_prepped.dtype.itemsize
                           + b_prepped.size * 4
                           + batch * n_padded * 4 + 4),
    )

    d_pad, znorm = pl.pallas_call(
        _ska_forward_kernel,
        grid=(num_k,),
        in_specs=[
            pl.BlockSpec((batch, tk), lambda k: (0, k)),        # x K-tile
            pl.BlockSpec((tk, n_padded), lambda k: (k, 0)),     # weight K-tile
            pl.BlockSpec((1, n_padded), lambda k: (0, 0)),      # bias (resident)
        ],
        out_specs=(
            pl.BlockSpec((batch, n_padded), lambda k: (0, 0)),  # D (resident)
            pl.BlockSpec((1, 1), lambda k: (0, 0),
                         memory_space=pltpu.MemorySpace.SMEM),  # scalar ||z||_F
        ),
        out_shape=(
            jax.ShapeDtypeStruct((batch, n_padded), jnp.float32),
            jax.ShapeDtypeStruct((1, 1), jnp.float32),
        ),
        scratch_shapes=[pltpu.VMEM((batch, n_padded), jnp.float32)],
        compiler_params=pltpu.CompilerParams(
            dimension_semantics=("arbitrary",)),                # K = reduction axis
        cost_estimate=cost,
    )(x_c, w_prepped, b_prepped)

    # Drop the zero-padded lanes (sigmoid(0) = 0.5 there) before returning.
    return d_pad[:, :layer_size], znorm[0, 0]


if __name__ == "__main__":
    # Small shapes consistent with the module: batch=2, NCHW image (4, 16, 16)
    # -> input_size = 4*16*16 = 1024, layer_size = 10.
    key = jax.random.PRNGKey(0)
    k_x, k_w = jax.random.split(key)

    batch, C, H, W = 2, 4, 16, 16
    input_size = C * H * W
    layer_size = 10

    x = jax.random.normal(k_x, (batch, C, H, W), dtype=jnp.float32)
    # nn.Parameter(torch.randn(...) * 0.01) / zeros init.
    weight = jax.random.normal(k_w, (input_size, layer_size), dtype=jnp.float32) * 0.01
    bias = jnp.zeros((layer_size,), dtype=jnp.float32)

    # Hoisted, one-time parameter prep (cast + pad), reused across forward calls.
    w_p, b_p = prepare_ska_params(weight, bias)

    D, z_norm = pure_ska_forward(x, w_p, b_p, layer_size=layer_size)
    D = jax.block_until_ready(D)
    z_norm = jax.block_until_ready(z_norm)

    # Pure-JAX reference with the same numerics (bf16 operands, f32 accumulate).
    x_flat = x.reshape(batch, -1)
    z_ref = jnp.dot(x_flat.astype(jnp.bfloat16), weight.astype(jnp.bfloat16),
                    preferred_element_type=jnp.float32) + bias
    D_ref = jax.nn.sigmoid(z_ref)
    znorm_ref = jnp.sqrt(jnp.sum(z_ref * z_ref))

    assert D.shape == (batch, layer_size)
    assert jnp.allclose(D, D_ref, atol=1e-4, rtol=1e-4), float(jnp.max(jnp.abs(D - D_ref)))
    assert jnp.allclose(z_norm, znorm_ref, atol=1e-3, rtol=1e-3), (float(z_norm), float(znorm_ref))

    print("KERNEL_OK")
</pallas_src>

<mosaic_0001>
module attributes {stable_mosaic.version = 11 : i64} {
  func.func @_ska_forward_kernel(%arg0: i32, %arg1: memref<2x512xbf16, #tpu.memory_space<vmem>>, %arg2: memref<512x128xbf16, #tpu.memory_space<vmem>>, %arg3: memref<1x128xf32, #tpu.memory_space<vmem>>, %arg4: memref<2x128xf32, #tpu.memory_space<vmem>>, %arg5: memref<1x1xf32, #tpu.memory_space<smem>>, %arg6: memref<2x128xf32, #tpu.memory_space<vmem>>) attributes {dimension_semantics = [#tpu.dimension_semantics<arbitrary>], iteration_bounds = array<i64: 2>, scalar_prefetch = 0 : i64, scratch_operands = 1 : i64, tpu.core_type = #tpu.core_type<tc>, window_params = [{transform_indices = @transform_0, window_bounds = array<i64: 2, 512>}, {transform_indices = @transform_1, window_bounds = array<i64: 512, 128>}, {pipeline_mode = #tpu.pipeline_mode<synchronous>, transform_indices = @transform_2, window_bounds = array<i64: 1, 128>}, {pipeline_mode = #tpu.pipeline_mode<synchronous>, transform_indices = @transform_3, window_bounds = array<i64: 2, 128>}, {transform_indices = @transform_4, window_bounds = array<i64: 1, 1>}]} {
    %c0_i32 = arith.constant 0 : i32
    %0 = arith.cmpi eq, %arg0, %c0_i32 : i32
    %1 = arith.extui %0 : i1 to i32
    %c0_i32_0 = arith.constant 0 : i32
    %2 = arith.cmpi ne, %1, %c0_i32_0 : i32
    scf.if %2 {
      %cst_9 = arith.constant 0.000000e+00 : f32
      %12 = vector.broadcast %cst_9 : f32 to vector<2x128xf32>
      %c0_10 = arith.constant 0 : index
      %c0_11 = arith.constant 0 : index
      %13 = vector.load %arg6[%c0_10, %c0_11] : memref<2x128xf32, #tpu.memory_space<vmem>>, vector<2x128xf32>
      tpu.vector_store %arg6[%c0_10, %c0_11], %12 {strides = array<i32>} : memref<2x128xf32, #tpu.memory_space<vmem>>, vector<2x128xf32>,
    } else {
    }
    %c0 = arith.constant 0 : index
    %c0_1 = arith.constant 0 : index
    %3 = vector.load %arg6[%c0, %c0_1] : memref<2x128xf32, #tpu.memory_space<vmem>>, vector<2x128xf32>
    %c0_2 = arith.constant 0 : index
    %c0_3 = arith.constant 0 : index
    %4 = vector.load %arg1[%c0_2, %c0_3] : memref<2x512xbf16, #tpu.memory_space<vmem>>, vector<2x512xbf16>
    %c0_4 = arith.constant 0 : index
    %c0_5 = arith.constant 0 : index
    %5 = vector.load %arg2[%c0_4, %c0_5] : memref<512x128xbf16, #tpu.memory_space<vmem>>, vector<512x128xbf16>
    %cst = arith.constant dense<0.000000e+00> : vector<2x128xf32>
    %6 = tpu.matmul %4, %5, %cst {dimension_numbers = #tpu.dot_dimension_numbers<[1], [0], [0], [1], [0, 0, 1, 1], [], []>} : vector<2x512xbf16>, vector<512x128xbf16>, vector<2x128xf32> -> vector<2x128xf32>
    %7 = arith.addf %3, %6 : vector<2x128xf32>
    %c0_6 = arith.constant 0 : index
    %c0_7 = arith.constant 0 : index
    %8 = vector.load %arg6[%c0_6, %c0_7] : memref<2x128xf32, #tpu.memory_space<vmem>>, vector<2x128xf32>
    tpu.vector_store %arg6[%c0_6, %c0_7], %7 {strides = array<i32>} : memref<2x128xf32, #tpu.memory_space<vmem>>, vector<2x128xf32>,
    %c1_i32 = arith.constant 1 : i32
    %9 = arith.cmpi eq, %arg0, %c1_i32 : i32
    %10 = arith.extui %9 : i1 to i32
    %c0_i32_8 = arith.constant 0 : i32
    %11 = arith.cmpi ne, %10, %c0_i32_8 : i32
    scf.if %11 {
      %c0_9 = arith.constant 0 : index
      %c0_10 = arith.constant 0 : index
      %12 = vector.load %arg6[%c0_9, %c0_10] : memref<2x128xf32, #tpu.memory_space<vmem>>, vector<2x128xf32>
      %c0_11 = arith.constant 0 : index
      %c0_12 = arith.constant 0 : index
      %13 = vector.load %arg3[%c0_11, %c0_12] : memref<1x128xf32, #tpu.memory_space<vmem>>, vector<1x128xf32>
      %14 = vector.broadcast %13 : vector<1x128xf32> to vector<2x128xf32>
      %15 = arith.addf %12, %14 : vector<2x128xf32>
      %16 = arith.negf %15 : vector<2x128xf32>
      %17 = math.exp %16 : vector<2x128xf32>
      %cst_13 = arith.constant 1.000000e+00 : f32
      %18 = vector.broadcast %cst_13 : f32 to vector<2x128xf32>
      %19 = arith.addf %18, %17 : vector<2x128xf32>
      %20 = arith.divf %18, %19 : vector<2x128xf32>
      %c0_14 = arith.constant 0 : index
      %c0_15 = arith.constant 0 : index
      %21 = vector.load %arg4[%c0_14, %c0_15] : memref<2x128xf32, #tpu.memory_space<vmem>>, vector<2x128xf32>
      tpu.vector_store %arg4[%c0_14, %c0_15], %20 {strides = array<i32>} : memref<2x128xf32, #tpu.memory_space<vmem>>, vector<2x128xf32>,
      %22 = arith.mulf %15, %15 : vector<2x128xf32>
      %23 = vector.shape_cast %22 : vector<2x128xf32> to vector<1x2x128xf32>
      %cst_16 = arith.constant dense<0.000000e+00> : vector<1xf32>
      %24 = vector.multi_reduction <add>, %23, %cst_16 [1, 2] : vector<1x2x128xf32> to vector<1xf32>
      %25 = vector.shape_cast %24 : vector<1xf32> to vector<1x1x1xf32>
      %26 = vector.extract %25[0, 0, 0] : f32 from vector<1x1x1xf32>
      %27 = math.sqrt %26 : f32
      %c0_17 = arith.constant 0 : index
      %c0_18 = arith.constant 0 : index
      %28 = memref.load %arg5[%c0_17, %c0_18] : memref<1x1xf32, #tpu.memory_space<smem>>
      memref.store %27, %arg5[%c0_17, %c0_18] : memref<1x1xf32, #tpu.memory_space<smem>>
    } else {
    }
    return
  }
  func.func @transform_0(%arg0: i32) -> (i32, i32) {
    %c0_i32 = arith.constant 0 : i32
    %c0_i32_0 = arith.constant 0 : i32
    return %c0_i32, %arg0 : i32, i32
  }
  func.func @transform_1(%arg0: i32) -> (i32, i32) {
    %c0_i32 = arith.constant 0 : i32
    %c0_i32_0 = arith.constant 0 : i32
    return %arg0, %c0_i32 : i32, i32
  }
  func.func @transform_2(%arg0: i32) -> (i32, i32) {
    %c0_i32 = arith.constant 0 : i32
    %c0_i32_0 = arith.constant 0 : i32
    %c0_i32_1 = arith.constant 0 : i32
    return %c0_i32, %c0_i32_0 : i32, i32
  }
  func.func @transform_3(%arg0: i32) -> (i32, i32) {
    %c0_i32 = arith.constant 0 : i32
    %c0_i32_0 = arith.constant 0 : i32
    %c0_i32_1 = arith.constant 0 : i32
    return %c0_i32, %c0_i32_0 : i32, i32
  }
  func.func @transform_4(%arg0: i32) -> (i32, i32) {
    %c0_i32 = arith.constant 0 : i32
    %c0_i32_0 = arith.constant 0 : i32
    %c0_i32_1 = arith.constant 0 : i32
    return %c0_i32, %c0_i32_0 : i32, i32
  }
}

</mosaic_0001>

<bundles_post_ra>
// kernel: pure_ska_forward.1
= control target key start
LH: loop header
LB: loop body
LE: loop exit
PB: predicated region body
PF: predicated region fallthrough
CT: control target
= control target key end

     0   :  { %10 = vsyncpa [#allocation4], 0  ;;  %s1232_s0 = inlined_call_operand.vmem [shape: bf16[2,1024], index: 0, kind: input, shape index: {}]   ;;  %s1233_s1 = inlined_call_operand.hbm [shape: bf16[1024,128], index: 1, kind: input, shape index: {}]   ;;  %s1234_s2 = inlined_call_operand.vmem [shape: f32[1,128], index: 2, kind: input, shape index: {}]   ;;  %s1235_s3 = inlined_call_operand.hbm [shape: f32[2,128], index: 3, kind: output, shape index: {0}]   ;;  %s1236_s4 = inlined_call_operand.hbm [shape: f32[1,1], index: 4, kind: output, shape index: {1}]  }
   0x1   :  { %12 = vsyncpa [#allocation4 + $0x1], 0 }
   0x2   :  { %13 = vsyncpa [#allocation5], 0 }
   0x3   :  { %14 = vsyncpa [#allocation6], 0  ;;  %s1064_s15 = smov 0   ;;  %s1066_s16 = smov 0  }
   0x4   :  { %s1068_s17 = smov 0   ;;  %s1070_s18 = smov 0  }
   0x5 LB: > { %s1083_s19 = sadd.s32 4294967295, %s1030_s18   ;;  %s1086_s20 = sadd.s32 1, %s1030_s18   ;;  %s1030_s18 = sphi %s1070_s18, %s1245_s18   ;;  %s1026_s17 = sphi %s1068_s17, %s1244_s17   ;;  %s1022_s16 = sphi %s1066_s16, %s1243_s16   ;;  %s1018_s15 = sphi %s1064_s15, %s1242_s15  }
   0x6   : > { %s50_s21 = ssub.s32 %s1030_s18, %s1086_s20  ;;  %s53_s22 = sadd.s32 1, %s1026_s17 }
   0x7   : > { %p51_p0 = scmp.eq.s32.totalorder %s50_s21, 0  ;;  %p60_p1 = scmp.ne.s32.totalorder %s1026_s17, %s1022_s16 }
   0x8   : > { %p61_p2 = scmp.eq.s32.totalorder %s1030_s18, 0  ;;  %p66_p3 = scmp.ne.s32.totalorder %s1022_s16, %s1018_s15 }
   0x9   : > { %s1096_s23 = scalar_select %p51_p0, %s1026_s17, %s53_s22  }
   0xa   : > { %p62_p4 = por %p61_p2, %p60_p1  ;;  %p67_p5 = scmp.eq.s32.totalorder %s1083_s19, 0 }
   0xb   : > { %p845_p6 = scmp.lt.s32.totalorder %s1030_s18, 2  ;;  %s164_s25 = sand.u32 1, %s1026_s17  }
   0xc   : > { %p1100_p7 = por %p67_p5, %p66_p3  ;;  %s733_s26 = sshll.u32 %s164_s25, 8 }
   0xd   : > { %s782_s27 = sshll.u32 %s1030_s18, 12  ;;  %s168_s5 = scalar_lea.vmem [#allocation3], %s733_s26 }
   0xe   : > { %s1238_s24 = scalar_select %p1100_p7, 1, 0 }
   0xf   : > { %s1109_s30 = scalar_lea.hbm %s1233_s1, %s782_s27  ;;  %s175_s6 = sshll.u32 %s168_s5, 4  ;;  %s1111_s6 = int_to_ptr.vmem [resolvable:$true] %s175_s6 }
  0x10   : > { %p1113_p8 = pnand %p845_p6, %p62_p4  ;;  %s1118_s8 = scalar_lea.sflag [#allocation4], %s164_s25 }
  0x11   : > { %s926_s9 = scalar_lea.hbm %s1109_s30, 4096  ;;  %s931_s12 = scalar_lea.hbm %s1233_s1, 8192 }
  0x12   : > { %p927_p10 = scmp.ne.s32.totalorder %s1109_s30, %s926_s9  ;;  %p928_p11 = pneg %p1113_p8 }
  0x13   : > { %p932_p0 = scmp.lt.s32.totalorder %s1109_s30, %s1233_s1  ;;  %p933_p1 = scmp.lt.s32.totalorder %s931_s12, %s926_s9 }
  0x14   : > { %p929_p12 = pnand %p928_p11, %p927_p10 }
  0x15   : > { %p934_p2 = por %p933_p1, %p932_p0 }
  0x16   : > { %p930_p13 = pneg %p929_p12 }
  0x18   : > { %p935_p3 = pnand %p934_p2, %p930_p13 }
  0x1a   : > { %938 = shalt.err (!%p935_p3)
}
  0x1b   : > { %s939_s15 = scalar_lea.vmem %s1111_s6, 4096  ;;  %s1032_s21 = smov [#allocation3]  }
  0x1c   : > { %p940_p4 = scmp.ne.s32.totalorder %s1111_s6, %s939_s15  ;;  %s944_s22 = sshll.u32 %s1032_s21, 4  ;;  %s945_s22 = int_to_ptr.vmem [resolvable:$false] %s944_s22 }
  0x1d   : > { %s946_s25 = scalar_lea.vmem %s945_s22, 8192  ;;  %p947_p10 = scmp.lt.s32.totalorder %s1111_s6, %s945_s22 }
  0x1e   : > { %p942_p5 = pnand %p940_p4, %p928_p11  ;;  %p948_p12 = scmp.lt.s32.totalorder %s946_s25, %s939_s15 }
  0x20   : > { %p943_p6 = pneg %p942_p5  ;;  %p949_p9 = por %p948_p12, %p947_p10 }
  0x22   : > { %p950_p7 = pnand %p949_p9, %p943_p6 }
  0x24   : > { %953 = shalt.err (!%p950_p7)
}
  0x25   : > { %s1033_s26 = smov 64   ;;  %s1034_s27 = smov 4  }
  0x26   : > { %844 = dma.hbm_to_vmem [thread:$0]  (!%p1113_p8), %s1109_s30, 4096, %s1111_s6, %s1118_s8, %s1033_s26, %s1033_s26, %s1034_s27  }
  0x27   : > { %p183_p11 = scmp.lt.s32.totalorder %s1030_s18, 3  ;;  %p1240_p13 = scmp.ge.s32.totalorder %s1030_s18, 1 }
  0x29   : > { %p184_p0 = pnand %p1240_p13, %p183_p11 }
  0x2a   : > { %s189_s28 = sand.u32 (!%p184_p0), 1, %s1022_s16   ;;  %p1241_p7 = scmp.ne.s32.totalorder (!%p184_p0), %s1238_s24, 0 }
  0x2b   : > { %187 = sbr.rel (%p184_p0) target bundleno = 597 (0x255), region = 32  ;;  %s737_s29 = sshll.u32 (!%p184_p0), %s189_s28, 8 }
  0x2c   : > { %s190_s5 = scalar_lea.sflag (!%p184_p0), [#allocation4], %s189_s28  ;;  %s1143_s9 = scalar_lea.vmem (!%p184_p0), [#allocation3], %s737_s29 }
  0x30   : > { %1005 = dma.done.wait (%p1241_p7), %s190_s5, 4096  }
  0x31   : > { %1007 = vsyncadd (%p1241_p7), %s190_s5, 4294963200  ;;  %s738_s10 = sshll.u32 %s1083_s19, 2  ;;  %p739_p8 = scmp.ne.s32.totalorder %s1083_s19, 0 }
  0x32   : > { %p218_p9 = scmp.lt.s32.totalorder %s738_s10, 7 }
  0x33   : > { %227 = sbr.rel (%p739_p8) target bundleno = 58 (0x3a), region = 40 }
  0x34   : > { %s1247_s10 = smov (!%p218_p9, %s738_s10), 7 }
  0x35   : > { %s220_s6 = scalar_lea.vmem %s1232_s0, %s1247_s10 }
  0x38   : > { %v1035_v0 = vmov 0.0  }
  0x39   : > { %228 = vst [vmem:[#allocation2] sm:$0x3] %v1035_v0 }
  0x3a PF: > { %v888_v1 = vld [vmem:[%s1143_s9 + $0x78] sm:$0xff]   ;;  %v892_v5 = vld [vmem:[%s1143_s9 + $0x70] sm:$0xff]   ;;  %v896_v9 = vld [vmem:[%s1143_s9 + $0x68] sm:$0xff]   ;;  %v307_v31 = vlaneseq  ;;  %v1036_v35 = vmov 1966171168   ;;  %p773_p1 = scmp.ne.s32.totalorder %s1083_s19, 1 }
  0x3b   : > { %v889_v2 = vld [vmem:[%s1143_s9 + $0xf8] sm:$0xff]   ;;  %783 = vmatprep.subr.bf16.mxu0 %v888_v1  ;;  %v893_v6 = vld [vmem:[%s1143_s9 + $0xf0] sm:$0xff]   ;;  %v897_v10 = vld [vmem:[%s1143_s9 + $0xe8] sm:$0xff]   ;;  %v305_v36 = vunpack.c.l.s4 %v1036_v35 }
  0x3c   : > { %v890_v3 = vld [vmem:[%s1143_s9 + $0x38] sm:$0xff]   ;;  %805 = vmatprep.subr.bf16.mxu1 %v889_v2  ;;  %v894_v7 = vld [vmem:[%s1143_s9 + $0x30] sm:$0xff]   ;;  %v898_v11 = vld [vmem:[%s1143_s9 + $0x28] sm:$0xff]   ;;  %v308_v37 = vshrl.u32 %v307_v31, 7 }
  0x3d   : > { %v891_v4 = vld [vmem:[%s1143_s9 + $0xb8] sm:$0xff]   ;;  %784 = vmatpush3.bf16.msra.mxu0 %v890_v3  ;;  %v895_v8 = vld [vmem:[%s1143_s9 + $0xb0] sm:$0xff]   ;;  %v899_v12 = vld [vmem:[%s1143_s9 + $0xa8] sm:$0xff]   ;;  %v306_v39 = vunpack.c.0.s8 %v305_v36 }
  0x3e   : > { %806 = vmatpush3.bf16.msra.mxu1 %v891_v4  ;;  %785 = vmatprep.subr.bf16.mxu0 %v892_v5  ;;  %v900_v13 = vld [vmem:[%s1143_s9 + $0x60] sm:$0xff]   ;;  %v904_v17 = vld [vmem:[%s1143_s9 + $0x58] sm:$0xff]   ;;  %v908_v21 = vld [vmem:[%s1143_s9 + $0x50] sm:$0xff]  }
  0x3f   : > { %807 = vmatprep.subr.bf16.mxu1 %v893_v6  ;;  %v901_v14 = vld [vmem:[%s1143_s9 + $0xe0] sm:$0xff]   ;;  %v905_v18 = vld [vmem:[%s1143_s9 + $0xd8] sm:$0xff]   ;;  %v909_v22 = vld [vmem:[%s1143_s9 + $0xd0] sm:$0xff]   ;;  %v309_v40 = vsub.s32 %v306_v39, %v308_v37 }
  0x40   : > { %v902_v15 = vld [vmem:[%s1143_s9 + $0x20] sm:$0xff]   ;;  %v906_v19 = vld [vmem:[%s1143_s9 + $0x18] sm:$0xff]   ;;  %v910_v23 = vld [vmem:[%s1143_s9 + $0x10] sm:$0xff]  }
  0x41   : > { %786 = vmatpush3.bf16.msra.mxu0 %v894_v7  ;;  %v903_v16 = vld [vmem:[%s1143_s9 + $0xa0] sm:$0xff]   ;;  %v907_v20 = vld [vmem:[%s1143_s9 + $0x98] sm:$0xff]   ;;  %v911_v24 = vld [vmem:[%s1143_s9 + $0x90] sm:$0xff]  }
  0x42   : > { %808 = vmatpush3.bf16.msra.mxu1 %v895_v8  ;;  %787 = vmatprep.subr.bf16.mxu0 %v896_v9  ;;  %v912_v25 = vld [vmem:[%s1143_s9 + $0x48] sm:$0xff]   ;;  %v916_v29 = vld [vmem:[%s1143_s9 + $0x40] sm:$0xff]   ;;  %v229_v52 = vld [vmem:[#allocation2] sm:$0x3] }
  0x43   : > { %809 = vmatprep.subr.bf16.mxu1 %v897_v10  ;;  %v913_v26 = vld [vmem:[%s1143_s9 + $0xc8] sm:$0xff]   ;;  %v917_v30 = vld [vmem:[%s1143_s9 + $0xc0] sm:$0xff]  }
  0x44   : > { %v914_v27 = vld [vmem:[%s1143_s9 + $0x8] sm:$0xff]   ;;  %v918_v32 = vld [vmem:[%s1143_s9] sm:$0xff]  }
  0x45   : > { %788 = vmatpush3.bf16.msra.mxu0 %v898_v11  ;;  %v915_v28 = vld [vmem:[%s1143_s9 + $0x88] sm:$0xff]   ;;  %v919_v33 = vld [vmem:[%s1143_s9 + $0x80] sm:$0xff]  }
  0x46   : > { %810 = vmatpush3.bf16.msra.mxu1 %v899_v12  ;;  %789 = vmatprep.subr.bf16.mxu0 %v900_v13  ;;  %v740_v34 = vld.sshfl [vmem:[%s220_s6] sm:$0x33 pattern:$0x75316420] }
  0x47   : > { %811 = vmatprep.subr.bf16.mxu1 %v901_v14  ;;  %v303_v38 = vcombine.high %v740_v34, %v740_v34  ;;  %v310_v42 = vrot.slane %v740_v34, %v309_v40 }
  0x49   : > { %790 = vmatpush3.bf16.msra.mxu0 %v902_v15  ;;  %v317_v41 = vrot.slane %v303_v38, %v309_v40  ;;  %v318_v44 = vcombine.high %v310_v42, %v310_v42 }
  0x4a   : > { %812 = vmatpush3.bf16.msra.mxu1 %v903_v16  ;;  %791 = vmatprep.subr.bf16.mxu0 %v904_v17 }
  0x4b   : > { %813 = vmatprep.subr.bf16.mxu1 %v905_v18  ;;  %548 = vmatprep.mubr.bf16.mxu0 %v317_v41  ;;  %v319_v43 = vcombine.high %v317_v41, %v317_v41 }
  0x4d   : > { %792 = vmatpush3.bf16.msra.mxu0 %v906_v19  ;;  %588 = vmatprep.mubr.bf16.mxu1 %v319_v43 }
  0x4e   : > { %814 = vmatpush3.bf16.msra.mxu1 %v907_v20  ;;  %793 = vmatprep.subr.bf16.mxu0 %v908_v21 }
  0x4f   : > { %815 = vmatprep.subr.bf16.mxu1 %v909_v22 }
  0x51   : > { %794 = vmatpush3.bf16.msra.mxu0 %v910_v23 }
  0x52   : > { %816 = vmatpush3.bf16.msra.mxu1 %v911_v24  ;;  %795 = vmatprep.subr.bf16.mxu0 %v912_v25 }
  0x53   : > { %817 = vmatprep.subr.bf16.mxu1 %v913_v26 }
  0x55   : > { %796 = vmatpush3.bf16.msra.mxu0 %v914_v27 }
  0x56   : > { %818 = vmatpush3.bf16.msra.mxu1 %v915_v28  ;;  %797 = vmatprep.subr.bf16.mxu0 %v916_v29 }
  0x57   : > { %819 = vmatprep.subr.bf16.mxu1 %v917_v30 }
  0x59   : > { %798 = vmatpush3.bf16.msra.mxu0 %v918_v32 }
  0x5a   : > { %820 = vmatpush3.bf16.msra.mxu1 %v919_v33 }
  0x5c   : > { %549 = vmatmul.mubr.bf16.vlgmr.msra.gmra.mxu0 %v310_v42 }
  0x5d   : > { %589 = vmatmul.mubr.bf16.vlgmr.msra.gmra.mxu1 %v318_v44 }
 0x11c   : > { %v799_v45 = vpop.f32.mrf.mxu0 }
 0x11d   : > { %v821_v46 = vpop.f32.mrf.mxu1 }
 0x11e   : > { %v800_v47 = vpop.f32.mrf.mxu0 }
 0x11f   : > { %v801_v48 = vadd.f32 %v800_v47, %v799_v45  ;;  %v822_v49 = vpop.f32.mrf.mxu1 }
 0x120   : > { %v802_v50 = vpop.f32.mrf.mxu0  ;;  %v823_v51 = vadd.f32 %v822_v49, %v821_v46 }
 0x121   : > { %v824_v53 = vpop.f32.mrf.mxu1 }
 0x122   : > { %v803_v54 = vpop.f32.mrf.mxu0  ;;  %v591_v55 = vadd.f32 %v823_v51, %v801_v48  ;;  %601 = sbr.rel (%p773_p1) target bundleno = 577 (0x241), region = 44 }
 0x123   : > { %v825_v56 = vpop.f32.mrf.mxu1 }
 0x124   : > { %v596_v57 = vadd.f32 %v591_v55, %v229_v52 }
 0x126   : > { %597 = vst [vmem:[#allocation2] sm:$0x3] %v596_v57 }
 0x127   : > { %v774_v59 = vld [vmem:[%s1234_s2] ss:$0 sm:$0xff]  ;;  %vm619_vm0 = vcmask 1041408  }
 0x12d   : > { %v602_v58 = vld [vmem:[#allocation2] sm:$0x3] }
 0x12e   : > { %v610_v60 = vadd.f32 %v774_v59, %v602_v58 }
 0x130   : > { %v775_v61 = vmul.f32 -1.442695, %v610_v60  ;;  %v618_v62 = vmul.f32 %v610_v60, %v610_v60 }
 0x132   : > { %920 = vpow2.f32 %v775_v61  ;;  %v620_v63 = vsel %vm619_vm0, %v618_v62, 0.0 }
 0x133   : > { %621 = vadd.xlane.f32.xlu0 %v620_v63 }
 0x13f   : > { %v921_v0 = vpop.eup %920 }
 0x140   : > { %v614_v1 = vadd.f32 1.0, %v921_v0 }
 0x142   : > { %922 = vrcp.f32 %v614_v1 }
 0x14f   : > { %v923_v2 = vpop.eup %922 }
 0x150   : > { %617 = vst [vmem:[#allocation7] sm:$0x3] %v923_v2 }
 0x1bc   : > { %v622_v3 = vpop.xlane.xlu0 %621 }
 0x1bd   : > { %v623_v4 = vrot.slane %v622_v3, 4 }
 0x1bf   : > { %v624_v5 = vadd.f32 %v623_v4, %v622_v3 }
 0x1c1   : > { %v625_v6 = vrot.slane %v624_v5, 2 }
 0x1c3   : > { %v626_v7 = vadd.f32 %v625_v6, %v624_v5 }
 0x1c5   : > { %v627_v8 = vrot.slane %v626_v7, 1 }
 0x1c7   : > { %v628_v9 = vadd.f32 %v627_v8, %v626_v7 }
 0x1c9   : > { %827 = vpush %v628_v9 }
 0x1fa   : > { %s828_s12 = spop %827 }
 0x1fb   : > { %v630_v10 = vstv %s828_s12 }
 0x1fc   : > { %924 = vrsqrt.f32 %v630_v10  ;;  %vm633_vm1 = vcmp.eq.f32.partialorder %v630_v10, inf  ;;  %v636_v13 = vand.u32 2147483648, %v630_v10  ;;  %vm635_vm2 = vcmp.eq.f32.partialorder %v630_v10, 0.0 }
 0x209   : > { %v925_v11 = vpop.eup %924 }
 0x20a   : > { %v632_v12 = vmul.f32 %v925_v11, %v630_v10 }
 0x20c   : > { %v634_v14 = vsel %vm633_vm1, %v630_v10, %v632_v12 }
 0x20d   : > { %v637_v15 = vsel %vm635_vm2, %v636_v13, %v634_v14 }
 0x20e   : > { %829 = vpush %v637_v15 }
 0x23f   : > { %s830_s13 = spop %829 }
 0x240   : > { %640 = sst [smem:[#allocation8]] %s830_s13 }
 0x241 PF: > { %p846_p2 = scmp.eq.s32.totalorder %s1083_s19, 1  ;;  %s1037_s14 = smov [#allocation7]  }
 0x242   : > { %s648_s15 = sshll.u32 %s1037_s14, 4  ;;  %s649_s15 = int_to_ptr.vmem [resolvable:$true] %s648_s15 }
 0x243   : > { %s954_s21 = scalar_lea.vmem %s649_s15, 32  ;;  %p961_p6 = scmp.lt.s32.totalorder %s649_s15, %s649_s15 }
 0x244   : > { %p955_p3 = scmp.ne.s32.totalorder %s649_s15, %s954_s21  ;;  %p962_p10 = scmp.lt.s32.totalorder %s954_s21, %s954_s21 }
 0x246   : > { %p956_p4 = pnand %p955_p3, %p846_p2  ;;  %p963_p12 = por %p962_p10, %p961_p6 }
 0x248   : > { %p957_p5 = pneg %p956_p4 }
 0x24a   : > { %p964_p11 = pnand %p963_p12, %p957_p5 }
 0x24c   : > { %967 = shalt.err (!%p964_p11)
}
 0x24d   : > { %834 = dma.vmem_to_hbm [thread:$0]  (%p846_p2), %s649_s15, 32, %s1235_s3, [#allocation5]  }
 0x24e   : > { %s1038_s26 = smov [#allocation8]  }
 0x24f   : > { %836 = dma.smem_to_hbm (%p846_p2), %s1038_s26, 16, %s1236_s4, [#allocation6]  }
 0x250   : > { %1009 = dma.done.wait (%p846_p2), [#allocation5], 32  }
 0x251   : > { %1011 = vsyncadd (%p846_p2), [#allocation5], 4294967264 }
 0x252   : > { %1013 = dma.done.wait (%p846_p2), [#allocation6], 16  }
 0x253   : > { %1015 = vsyncadd (%p846_p2), [#allocation6], 4294967280 }
 0x254   : > { %669 = sfence }
 0x255 PF: > { %p17_p13 = scmp.ge.s32.totalorder %s1086_s20, 4   ;;  %s1242_s15 = smov %s1022_s16 }
 0x256   : > { %s1243_s16 = smov %s1026_s17  ;;  %s1244_s17 = smov %s1096_s23 }
 0x257   : > { %s1245_s18 = smov %s1086_s20  ;;  %19 = sbr.rel (!%p17_p13) target bundleno = 5 (0x5), region = 90 }
 0x25c   :  { %675 = vsyncpa [#allocation4], 1 }
 0x25d   :  { %677 = vsyncpa [#allocation4 + $0x1], 1 }
 0x25e   :  { %678 = vsyncpa [#allocation5], 1 }
 0x25f   :  { %680 = vsyncpa [#allocation5 + $0x1], 1 }
 0x260   :  { %681 = vsyncpa [#allocation6], 1 }
 0x261   :  { %683 = vsyncpa [#allocation6 + $0x1], 1 }

</bundles_post_ra>
